<compile_context>
chip_gen: v7x
topology: tpu7x:2x2x1
jax: 0.10.0
libtpu: 0.0.40
codegen_flags: <defaults>
</compile_context>

<pallas_src>
import functools

import jax
import jax.numpy as jnp
from jax.experimental import pallas as pl
from jax.experimental.pallas import tpu as pltpu


def _iclassifier_kernel(hw, p_ref, w_ref, o_ref):
    # p_ref: (NHW_pad, CKP)  lane-padded im2col patches (+ ones column for bias)
    # w_ref: (CKP,     F)    flattened conv weight (+ bias row, zero padding)
    # o_ref: (N,       F)    pooled feature vectors (== feats.view(N, -1))
    acts = jnp.dot(p_ref[...], w_ref[...],
                   preferred_element_type=jnp.float32)            # (NHW_pad, F)  MXU, bias folded
    acts = jnp.maximum(acts, 0.0)                                 # ReLU (VPU)

    n, f = o_ref.shape
    nhw_pad = acts.shape[0]
    # Build the per-sample mean-pooling matrix in-register (no HBM traffic):
    # pool[i, r] = 1/HW  if  i*HW <= r < (i+1)*HW  else 0.
    row = jax.lax.broadcasted_iota(jnp.int32, (n, nhw_pad), 0)    # sample index
    col = jax.lax.broadcasted_iota(jnp.int32, (n, nhw_pad), 1)    # flattened-row index
    inside = (col >= row * hw) & (col < (row + 1) * hw)
    pool = jnp.where(inside, jnp.float32(1.0 / hw), jnp.float32(0.0))

    o_ref[...] = jnp.dot(pool, acts,
                         preferred_element_type=jnp.float32)      # mean pool as MXU matmul


def _im2col_lane_dense(x, k, pad, ck_pad, nhw_pad):
    """x: (N, C, H, W) -> patches (nhw_pad, ck_pad).

    Lane ordering of the receptive field is (c, ki, kj), matching
    conv_w.reshape(F, C*k*k).  Column C*k*k is all-ones (bias column); remaining
    lanes are zero padding up to ck_pad (multiple of 128).  Rows are zero-padded
    from N*H*W up to nhw_pad (multiple of 8 sublanes).
    """
    N, C, H, W = x.shape
    xp = jnp.pad(x, ((0, 0), (0, 0), (pad, pad), (pad, pad)))
    cols = []
    for di in range(k):
        for dj in range(k):
            cols.append(xp[:, :, di:di + H, dj:dj + W])           # (N, C, H, W)
    p = jnp.stack(cols, axis=-1)                                  # (N, C, H, W, k*k)
    p = jnp.transpose(p, (0, 2, 3, 1, 4))                         # (N, H, W, C, k*k)
    p = p.reshape(N * H * W, C * k * k)                           # lane-dense rows
    ones = jnp.ones((N * H * W, 1), p.dtype)                      # bias column
    zeros = jnp.zeros((N * H * W, ck_pad - C * k * k - 1), p.dtype)
    p = jnp.concatenate([p, ones, zeros], axis=-1)                # (N*HW, ck_pad)
    if nhw_pad > N * H * W:                                       # sublane padding
        p = jnp.pad(p, ((0, nhw_pad - N * H * W), (0, 0)))
    return p                                                      # (nhw_pad, ck_pad)


def iclassifier_forward(x, conv_w, conv_b):
    """Pallas implementation of IClassifier.forward for the conv feature extractor.

    x:      (N, C, H, W) float32  (NCHW, like PyTorch)
    conv_w: (F, C, k, k) float32
    conv_b: (F,)         float32
    returns feats.view(N, -1) == (N, F) float32
    """
    N, C, H, W = x.shape
    F, _, k, _ = conv_w.shape
    HW = H * W
    NHW = N * HW
    NHW_PAD = ((NHW + 7) // 8) * 8                                # sublane-aligned rows
    CK2 = C * k * k
    CKP = max(128, ((CK2 + 1 + 127) // 128) * 128)                # lane-padded K (>= CK2 + 1)

    # Inputs prepared in XLA glue; the hot path runs in one Pallas invocation.
    patches = _im2col_lane_dense(x, k=k, pad=k // 2, ck_pad=CKP, nhw_pad=NHW_PAD)
    w_t = conv_w.reshape(F, CK2).T                                # (CK2, F)
    w_pad = jnp.concatenate(
        [w_t, conv_b.reshape(1, F), jnp.zeros((CKP - CK2 - 1, F), w_t.dtype)],
        axis=0)                                                   # (CKP, F)

    cost = pl.CostEstimate(
        flops=2 * NHW_PAD * CKP * F + 2 * N * NHW_PAD * F,
        transcendentals=0,
        bytes_accessed=4 * (NHW_PAD * CKP + CKP * F + N * F),
    )

    out = pl.pallas_call(
        functools.partial(_iclassifier_kernel, HW),
        out_shape=jax.ShapeDtypeStruct((N, F), jnp.float32),
        grid=(1,),
        in_specs=[
            pl.BlockSpec((NHW_PAD, CKP), lambda i: (0, 0)),
            pl.BlockSpec((CKP, F), lambda i: (0, 0)),
        ],
        out_specs=pl.BlockSpec((N, F), lambda i: (0, 0)),
        cost_estimate=cost,
        compiler_params=pltpu.CompilerParams(
            dimension_semantics=("arbitrary",)),
    )(patches, w_pad)

    return out                                                    # (N, F) == feats.view(N, -1)


def _reference(x, conv_w, conv_b):
    """Plain-JAX reference of the same feature extractor (for verification)."""
    y = jax.lax.conv_general_dilated(
        x, conv_w, window_strides=(1, 1), padding="SAME",
        dimension_numbers=("NCHW", "OIHW", "NCHW"))
    y = y + conv_b.reshape(1, -1, 1, 1)
    y = jnp.maximum(y, 0.0)
    feats = jnp.mean(y, axis=(2, 3))                              # global avg pool -> (N, F)
    return feats.reshape(feats.shape[0], -1)


if __name__ == "__main__":
    key = jax.random.PRNGKey(0)
    k_x, k_w, k_b, k_fcw, k_fcb = jax.random.split(key, 5)

    N, C, H, W = 2, 4, 16, 16
    FEATURE_SIZE = 32
    OUTPUT_CLASS = 3
    KSIZE = 3

    x = jax.random.normal(k_x, (N, C, H, W), dtype=jnp.float32)
    conv_w = 0.1 * jax.random.normal(k_w, (FEATURE_SIZE, C, KSIZE, KSIZE), jnp.float32)
    conv_b = 0.1 * jax.random.normal(k_b, (FEATURE_SIZE,), jnp.float32)

    # fc = nn.Linear(feature_size, output_class): parameters exist in __init__
    # but are never used in IClassifier.forward (it returns the flattened feats).
    fc_w = 0.1 * jax.random.normal(k_fcw, (OUTPUT_CLASS, FEATURE_SIZE), jnp.float32)
    fc_b = jnp.zeros((OUTPUT_CLASS,), jnp.float32)

    feats = iclassifier_forward(x, conv_w, conv_b)
    feats = jax.block_until_ready(feats)

    ref = _reference(x, conv_w, conv_b)
    assert feats.shape == (N, FEATURE_SIZE)
    assert jnp.allclose(feats, ref, atol=1e-4, rtol=1e-4), "mismatch vs reference"

    print("KERNEL_OK")
</pallas_src>

<mosaic_0001>
module attributes {stable_mosaic.version = 11 : i64} {
  func.func @_iclassifier_kernel(%arg0: i32, %arg1: memref<512x128xf32, #tpu.memory_space<vmem>>, %arg2: memref<128x32xf32, #tpu.memory_space<vmem>>, %arg3: memref<2x32xf32, #tpu.memory_space<vmem>>) attributes {dimension_semantics = [#tpu.dimension_semantics<arbitrary>], iteration_bounds = array<i64: 1>, scalar_prefetch = 0 : i64, scratch_operands = 0 : i64, tpu.core_type = #tpu.core_type<tc>, window_params = [{pipeline_mode = #tpu.pipeline_mode<synchronous>, transform_indices = @transform_0, window_bounds = array<i64: 512, 128>}, {pipeline_mode = #tpu.pipeline_mode<synchronous>, transform_indices = @transform_1, window_bounds = array<i64: 128, 32>}, {pipeline_mode = #tpu.pipeline_mode<synchronous>, transform_indices = @transform_2, window_bounds = array<i64: 2, 32>}]} {
    %c0 = arith.constant 0 : index
    %c0_0 = arith.constant 0 : index
    %0 = vector.load %arg1[%c0, %c0_0] : memref<512x128xf32, #tpu.memory_space<vmem>>, vector<512x128xf32>
    %c0_1 = arith.constant 0 : index
    %c0_2 = arith.constant 0 : index
    %1 = vector.load %arg2[%c0_1, %c0_2] : memref<128x32xf32, #tpu.memory_space<vmem>>, vector<128x32xf32>
    %cst = arith.constant dense<0.000000e+00> : vector<512x32xf32>
    %2 = tpu.matmul %0, %1, %cst {dimension_numbers = #tpu.dot_dimension_numbers<[1], [0], [0], [1], [0, 0, 1, 1], [], []>} : vector<512x128xf32>, vector<128x32xf32>, vector<512x32xf32> -> vector<512x32xf32>
    %cst_3 = arith.constant 0.000000e+00 : f32
    %3 = vector.broadcast %cst_3 : f32 to vector<512x32xf32>
    %4 = arith.maximumf %2, %3 : vector<512x32xf32>
    %5 = tpu.iota {dimensions = array<i32: 0>} : vector<2x512xi32>
    %6 = tpu.iota {dimensions = array<i32: 1>} : vector<2x512xi32>
    %c256_i32 = arith.constant 256 : i32
    %7 = vector.broadcast %c256_i32 : i32 to vector<2x512xi32>
    %8 = arith.muli %5, %7 : vector<2x512xi32>
    %9 = arith.cmpi sge, %6, %8 : vector<2x512xi32>
    %c1_i32 = arith.constant 1 : i32
    %10 = vector.broadcast %c1_i32 : i32 to vector<2x512xi32>
    %11 = arith.addi %5, %10 : vector<2x512xi32>
    %c256_i32_4 = arith.constant 256 : i32
    %12 = vector.broadcast %c256_i32_4 : i32 to vector<2x512xi32>
    %13 = arith.muli %11, %12 : vector<2x512xi32>
    %14 = arith.cmpi slt, %6, %13 : vector<2x512xi32>
    %15 = arith.andi %9, %14 : vector<2x512xi1>
    %cst_5 = arith.constant 3.906250e-03 : f32
    %cst_6 = arith.constant 0.000000e+00 : f32
    %16 = vector.broadcast %cst_5 : f32 to vector<2x512xf32>
    %17 = vector.broadcast %cst_6 : f32 to vector<2x512xf32>
    %18 = arith.select %15, %16, %17 : vector<2x512xi1>, vector<2x512xf32>
    %cst_7 = arith.constant dense<0.000000e+00> : vector<2x32xf32>
    %19 = tpu.matmul %18, %4, %cst_7 {dimension_numbers = #tpu.dot_dimension_numbers<[1], [0], [0], [1], [0, 0, 1, 1], [], []>} : vector<2x512xf32>, vector<512x32xf32>, vector<2x32xf32> -> vector<2x32xf32>
    %c0_8 = arith.constant 0 : index
    %c0_9 = arith.constant 0 : index
    %20 = vector.load %arg3[%c0_8, %c0_9] : memref<2x32xf32, #tpu.memory_space<vmem>>, vector<2x32xf32>
    tpu.vector_store %arg3[%c0_8, %c0_9], %19 {strides = array<i32>} : memref<2x32xf32, #tpu.memory_space<vmem>>, vector<2x32xf32>,
    return
  }
  func.func @transform_0(%arg0: i32) -> (i32, i32) {
    %c0_i32 = arith.constant 0 : i32
    %c0_i32_0 = arith.constant 0 : i32
    %c0_i32_1 = arith.constant 0 : i32
    return %c0_i32, %c0_i32_0 : i32, i32
  }
  func.func @transform_1(%arg0: i32) -> (i32, i32) {
    %c0_i32 = arith.constant 0 : i32
    %c0_i32_0 = arith.constant 0 : i32
    %c0_i32_1 = arith.constant 0 : i32
    return %c0_i32, %c0_i32_0 : i32, i32
  }
  func.func @transform_2(%arg0: i32) -> (i32, i32) {
    %c0_i32 = arith.constant 0 : i32
    %c0_i32_0 = arith.constant 0 : i32
    %c0_i32_1 = arith.constant 0 : i32
    return %c0_i32, %c0_i32_0 : i32, i32
  }
}

</mosaic_0001>

<bundles_post_ra>
// kernel: tpu_custom_call.1
= control target key start
LH: loop header
LB: loop body
LE: loop exit
PB: predicated region body
PF: predicated region fallthrough
CT: control target
= control target key end

     0   :  { %7 = vsyncpa [#allocation3], 0  ;;  %s1356_s0 = inlined_call_operand.hbm [shape: f32[512,128], index: 0, kind: input, shape index: {}]   ;;  %s1357_s1 = inlined_call_operand.vmem [shape: f32[128,32], index: 1, kind: input, shape index: {}]   ;;  %s1358_s2 = inlined_call_operand.hbm [shape: f32[2,32], index: 2, kind: output, shape index: {}]  }
   0x1   :  { %8 = vsyncpa [#allocation4], 0  ;;  %s1185_s9 = smov [#allocation2]   ;;  %s1137_s13 = scalar_lea.hbm %s1356_s0, 8192 }
   0x2   :  { %s14_s10 = sshll.u32 %s1185_s9, 4  ;;  %p1138_p0 = scmp.ne.s32.totalorder %s1356_s0, %s1137_s13  ;;  %s15_s10 = int_to_ptr.vmem [resolvable:$true] %s14_s10 }
   0x3   :  { %p1141_p1 = scmp.lt.u32.totalorder %s1137_s13, %s1356_s0 }
   0x5   :  { %p1143_p2 = pnand %p1141_p1, %p1138_p0 }
   0x7   :  { %1146 = shalt.err (!%p1143_p2)
}
   0x8   :  { %s1147_s18 = scalar_lea.vmem %s15_s10, 8192  ;;  %p1152_p4 = scmp.lt.s32.totalorder %s15_s10, %s15_s10 }
   0x9   :  { %p1148_p3 = scmp.ne.s32.totalorder %s15_s10, %s1147_s18  ;;  %p1153_p5 = scmp.lt.s32.totalorder %s1147_s18, %s1147_s18 }
   0xb   :  { %p1154_p6 = por %p1153_p5, %p1152_p4 }
   0xd   :  { %p1155_p7 = pnand %p1154_p6, %p1148_p3 }
   0xf   :  { %1158 = shalt.err (!%p1155_p7)
}
  0x10   :  { %s1186_s19 = smov 128   ;;  %s1187_s20 = smov 8  }
  0x11   :  { %20 = dma.hbm_to_vmem [thread:$0]  %s1356_s0, 8192, %s15_s10, [#allocation3], %s1186_s19, %s1186_s19, %s1187_s20  }
  0x12   :  { %1181 = dma.done.wait [#allocation3], 8192  }
  0x13   :  { %1182 = vsyncadd [#allocation3], 4294959104  ;;  %v90_v0 = vld [vmem:[%s1357_s1] sm:$0xff]  ;;  %v91_v1 = vld [vmem:[%s1357_s1 + $0x8] sm:$0xff]  ;;  %vm721_vm12 = vcmask 254976  }
  0x14   :  { %v92_v2 = vld [vmem:[%s1357_s1 + $0x10] sm:$0xff]  ;;  %v1020_v3 = vpack.c.bf16 %v91_v1, %v90_v0  ;;  %v93_v4 = vld [vmem:[%s1357_s1 + $0x18] sm:$0xff]  ;;  %v94_v6 = vld [vmem:[%s1357_s1 + $0x20] sm:$0xff] }
  0x15   :  { %v1024_v5 = vpack.c.bf16 %v93_v4, %v92_v2  ;;  %v95_v7 = vld [vmem:[%s1357_s1 + $0x28] sm:$0xff]  ;;  %v26_v9 = vld [vmem:[#allocation2] sm:$0xff]  ;;  %v96_v10 = vld [vmem:[%s1357_s1 + $0x30] sm:$0xff] }
  0x16   :  { %1021 = vmatprep.subr.bf16.mxu0 %v1020_v3  ;;  %1116 = vmatprep.subr.bf16.mxu1 %v1020_v3  ;;  %v1028_v8 = vpack.c.bf16 %v95_v7, %v94_v6  ;;  %v97_v11 = vld [vmem:[%s1357_s1 + $0x38] sm:$0xff]  ;;  %v98_v13 = vld [vmem:[%s1357_s1 + $0x40] sm:$0xff]  ;;  %v99_v14 = vld [vmem:[%s1357_s1 + $0x48] sm:$0xff] }
  0x17   :  { %1023 = vmatpush3.bf16.msra.mxu0 %v1020_v3  ;;  %1124 = vmatpush3.bf16.msra.mxu1 %v1020_v3  ;;  %v1032_v12 = vpack.c.bf16 %v97_v11, %v96_v10  ;;  %v1036_v15 = vpack.c.bf16 %v99_v14, %v98_v13  ;;  %v100_v16 = vld [vmem:[%s1357_s1 + $0x50] sm:$0xff]  ;;  %v101_v17 = vld [vmem:[%s1357_s1 + $0x58] sm:$0xff]  ;;  %v102_v20 = vld [vmem:[%s1357_s1 + $0x60] sm:$0xff] }
  0x18   :  { %1025 = vmatprep.subr.bf16.mxu0 %v1024_v5  ;;  %1117 = vmatprep.subr.bf16.mxu1 %v1024_v5  ;;  %v68_v18 = vld [vmem:[#allocation2 + $0x150] sm:$0xff]  ;;  %v1040_v19 = vpack.c.bf16 %v101_v17, %v100_v16  ;;  %v103_v21 = vld [vmem:[%s1357_s1 + $0x68] sm:$0xff]  ;;  %v105_v24 = vld [vmem:[%s1357_s1 + $0x78] sm:$0xff] }
  0x19   :  { %924 = vmatprep.mubr.f32.mxu0 %v26_v9  ;;  %987 = vmatprep.mubr.f32.mxu1 %v68_v18  ;;  %v1044_v22 = vpack.c.bf16 %v103_v21, %v102_v20  ;;  %v104_v23 = vld [vmem:[%s1357_s1 + $0x70] sm:$0xff]  ;;  %v27_v26 = vld [vmem:[#allocation2 + $0x8] sm:$0xff]  ;;  %v69_v27 = vld [vmem:[#allocation2 + $0x158] sm:$0xff]  ;;  %s1189_s1 = smov [#allocation5]  }
  0x1a   :  { %v1048_v25 = vpack.c.bf16 %v105_v24, %v104_v23  ;;  %v28_v28 = vld [vmem:[#allocation2 + $0x10] sm:$0xff]  ;;  %v70_v29 = vld [vmem:[#allocation2 + $0x160] sm:$0xff]  ;;  %v29_v30 = vld [vmem:[#allocation2 + $0x18] sm:$0xff]  ;;  %v555_v24 = vlaneseq  ;;  %s729_s26 = sshll.u32 %s1189_s1, 4  ;;  %s730_s26 = int_to_ptr.vmem [resolvable:$true] %s729_s26 }
  0x1b   :  { %1027 = vmatpush3.bf16.msra.mxu0 %v1024_v5  ;;  %1125 = vmatpush3.bf16.msra.mxu1 %v1024_v5  ;;  %v71_v31 = vld [vmem:[#allocation2 + $0x168] sm:$0xff]  ;;  %v30_v32 = vld [vmem:[#allocation2 + $0x20] sm:$0xff]  ;;  %v72_v33 = vld [vmem:[#allocation2 + $0x170] sm:$0xff]  ;;  %s1159_s27 = scalar_lea.vmem %s730_s26, 32  ;;  %p1164_p9 = scmp.lt.s32.totalorder %s730_s26, %s730_s26 }
  0x1c   :  { %1029 = vmatprep.subr.bf16.mxu0 %v1028_v8  ;;  %1118 = vmatprep.subr.bf16.mxu1 %v1028_v8  ;;  %v31_v34 = vld [vmem:[#allocation2 + $0x28] sm:$0xff]  ;;  %v73_v35 = vld [vmem:[#allocation2 + $0x178] sm:$0xff]  ;;  %v32_v36 = vld [vmem:[#allocation2 + $0x30] sm:$0xff]  ;;  %p1160_p8 = scmp.ne.s32.totalorder %s730_s26, %s1159_s27  ;;  %p1165_p10 = scmp.lt.s32.totalorder %s1159_s27, %s1159_s27 }
  0x1d   :  { %v74_v37 = vld [vmem:[#allocation2 + $0x180] sm:$0xff]  ;;  %v33_v38 = vld [vmem:[#allocation2 + $0x38] sm:$0xff]  ;;  %v75_v39 = vld [vmem:[#allocation2 + $0x188] sm:$0xff] }
  0x1e   :  { %v34_v40 = vld [vmem:[#allocation2 + $0x40] sm:$0xff]  ;;  %v76_v41 = vld [vmem:[#allocation2 + $0x190] sm:$0xff]  ;;  %v35_v42 = vld [vmem:[#allocation2 + $0x48] sm:$0xff]  ;;  %p1166_p11 = por %p1165_p10, %p1164_p9 }
  0x1f   :  { %1031 = vmatpush3.bf16.msra.mxu0 %v1028_v8  ;;  %1126 = vmatpush3.bf16.msra.mxu1 %v1028_v8  ;;  %v77_v43 = vld [vmem:[#allocation2 + $0x198] sm:$0xff]  ;;  %v36_v44 = vld [vmem:[#allocation2 + $0x50] sm:$0xff]  ;;  %v78_v45 = vld [vmem:[#allocation2 + $0x1a0] sm:$0xff] }
  0x20   :  { %1033 = vmatprep.subr.bf16.mxu0 %v1032_v12  ;;  %1119 = vmatprep.subr.bf16.mxu1 %v1032_v12  ;;  %v37_v46 = vld [vmem:[#allocation2 + $0x58] sm:$0xff]  ;;  %v79_v47 = vld [vmem:[#allocation2 + $0x1a8] sm:$0xff]  ;;  %v38_v48 = vld [vmem:[#allocation2 + $0x60] sm:$0xff]  ;;  %p1167_p12 = pnand %p1166_p11, %p1160_p8 }
  0x21   :  { %v80_v49 = vld [vmem:[#allocation2 + $0x1b0] sm:$0xff]  ;;  %v39_v50 = vld [vmem:[#allocation2 + $0x68] sm:$0xff]  ;;  %v81_v51 = vld [vmem:[#allocation2 + $0x1b8] sm:$0xff] }
  0x22   :  { %v40_v52 = vld [vmem:[#allocation2 + $0x70] sm:$0xff]  ;;  %v82_v53 = vld [vmem:[#allocation2 + $0x1c0] sm:$0xff]  ;;  %v41_v54 = vld [vmem:[#allocation2 + $0x78] sm:$0xff] }
  0x23   :  { %1035 = vmatpush3.bf16.msra.mxu0 %v1032_v12  ;;  %1127 = vmatpush3.bf16.msra.mxu1 %v1032_v12  ;;  %v83_v55 = vld [vmem:[#allocation2 + $0x1c8] sm:$0xff]  ;;  %v42_v56 = vld [vmem:[#allocation2 + $0x80] sm:$0xff]  ;;  %v84_v57 = vld [vmem:[#allocation2 + $0x1d0] sm:$0xff] }
  0x24   :  { %1037 = vmatprep.subr.bf16.mxu0 %v1036_v15  ;;  %1120 = vmatprep.subr.bf16.mxu1 %v1036_v15  ;;  %v43_v58 = vld [vmem:[#allocation2 + $0x88] sm:$0xff]  ;;  %v85_v59 = vld [vmem:[#allocation2 + $0x1d8] sm:$0xff]  ;;  %v44_v60 = vld [vmem:[#allocation2 + $0x90] sm:$0xff] }
  0x25   :  { %v86_v61 = vld [vmem:[#allocation2 + $0x1e0] sm:$0xff]  ;;  %v45_v62 = vld [vmem:[#allocation2 + $0x98] sm:$0xff]  ;;  %v87_v63 = vld [vmem:[#allocation2 + $0x1e8] sm:$0xff] }
  0x26   :  { %v46_v0 = vld [vmem:[#allocation2 + $0xa0] sm:$0xff]  ;;  %v88_v1 = vld [vmem:[#allocation2 + $0x1f0] sm:$0xff]  ;;  %v47_v2 = vld [vmem:[#allocation2 + $0xa8] sm:$0xff] }
  0x27   :  { %1039 = vmatpush3.bf16.msra.mxu0 %v1036_v15  ;;  %1128 = vmatpush3.bf16.msra.mxu1 %v1036_v15  ;;  %v89_v3 = vld [vmem:[#allocation2 + $0x1f8] sm:$0xff]  ;;  %v48_v4 = vld [vmem:[#allocation2 + $0xb0] sm:$0xff]  ;;  %v50_v6 = vld [vmem:[#allocation2 + $0xc0] sm:$0xff] }
  0x28   :  { %1041 = vmatprep.subr.bf16.mxu0 %v1040_v19  ;;  %1121 = vmatprep.subr.bf16.mxu1 %v1040_v19  ;;  %v49_v5 = vld [vmem:[#allocation2 + $0xb8] sm:$0xff]  ;;  %v51_v7 = vld [vmem:[#allocation2 + $0xc8] sm:$0xff]  ;;  %v52_v8 = vld [vmem:[#allocation2 + $0xd0] sm:$0xff] }
  0x29   :  { %v53_v9 = vld [vmem:[#allocation2 + $0xd8] sm:$0xff]  ;;  %v54_v10 = vld [vmem:[#allocation2 + $0xe0] sm:$0xff]  ;;  %v55_v11 = vld [vmem:[#allocation2 + $0xe8] sm:$0xff] }
  0x2a   :  { %v56_v12 = vld [vmem:[#allocation2 + $0xf0] sm:$0xff]  ;;  %v57_v13 = vld [vmem:[#allocation2 + $0xf8] sm:$0xff]  ;;  %v58_v14 = vld [vmem:[#allocation2 + $0x100] sm:$0xff] }
  0x2b   :  { %1043 = vmatpush3.bf16.msra.mxu0 %v1040_v19  ;;  %1129 = vmatpush3.bf16.msra.mxu1 %v1040_v19  ;;  %v59_v15 = vld [vmem:[#allocation2 + $0x108] sm:$0xff]  ;;  %v60_v16 = vld [vmem:[#allocation2 + $0x110] sm:$0xff]  ;;  %v61_v17 = vld [vmem:[#allocation2 + $0x118] sm:$0xff] }
  0x2c   :  { %1045 = vmatprep.subr.bf16.mxu0 %v1044_v22  ;;  %1122 = vmatprep.subr.bf16.mxu1 %v1044_v22  ;;  %v62_v18 = vld [vmem:[#allocation2 + $0x120] sm:$0xff]  ;;  %v63_v19 = vld [vmem:[#allocation2 + $0x128] sm:$0xff]  ;;  %v64_v20 = vld [vmem:[#allocation2 + $0x130] sm:$0xff] }
  0x2d   :  { %v65_v21 = vld [vmem:[#allocation2 + $0x138] sm:$0xff]  ;;  %v67_v23 = vld [vmem:[#allocation2 + $0x148] sm:$0xff] }
  0x2f   :  { %1047 = vmatpush3.bf16.msra.mxu0 %v1044_v22  ;;  %1130 = vmatpush3.bf16.msra.mxu1 %v1044_v22  ;;  %v66_v22 = vld [vmem:[#allocation2 + $0x140] sm:$0xff] }
  0x30   :  { %1049 = vmatprep.subr.bf16.mxu0 %v1048_v25  ;;  %1123 = vmatprep.subr.bf16.mxu1 %v1048_v25 }
  0x33   :  { %1051 = vmatpush3.bf16.msra.mxu0 %v1048_v25  ;;  %1131 = vmatpush3.bf16.msra.mxu1 %v1048_v25  ;;  %v556_v25 = vshrl.u32 %v555_v24, 7 }
  0x36   :  { %925 = vmatmul.mubr.f32.vlgmr.msra.gmra.mrb[0].mxu0 %v27_v26  ;;  %988 = vmatmul.mubr.f32.vlgmr.msra.gmra.mrb[0].mxu1 %v69_v27  ;;  %v558_v26 = vand.u32 127, %v555_v24  ;;  %v567_v27 = vadd.s32 1, %v556_v25 }
  0x37   :  { %927 = vmatprep.mubr.f32.mxu0 %v28_v28  ;;  %990 = vmatprep.mubr.f32.mxu1 %v70_v29  ;;  %v562_v29 = vmul.u32 256, %v556_v25 }
  0x38   :  { %v559_v28 = vadd.s32 128, %v558_v26 }
  0x39   :  { %vm563_vm3 = vcmp.ge.s32.totalorder %v558_v26, %v562_v29 }
  0x3a   :  { %928 = vmatmul.mubr.f32.gmra.mrb[2].mxu0 %v29_v30  ;;  %991 = vmatmul.mubr.f32.gmra.mrb[2].mxu1 %v71_v31  ;;  %v568_v30 = vmul.u32 256, %v567_v27  ;;  %vm564_vm0 = vcmp.ge.s32.totalorder %v559_v28, %v562_v29  ;;  %v1188_v31 = vmov 0.00390625  }
  0x3b   :  { %930 = vmatprep.mubr.f32.mxu0 %v30_v32  ;;  %993 = vmatprep.mubr.f32.mxu1 %v72_v33  ;;  %v561_v33 = vadd.s32 384, %v558_v26 }
  0x3c   :  { %vm570_vm1 = vcmp.lt.s32.totalorder %v559_v28, %v568_v30  ;;  %vm569_vm4 = vcmp.lt.s32.totalorder %v558_v26, %v568_v30 }
  0x3d   :  { %vm574_vm2 = vmand %vm564_vm0, %vm570_vm1  ;;  %vm566_vm6 = vcmp.ge.s32.totalorder %v561_v33, %v562_v29  ;;  %vm572_vm7 = vcmp.lt.s32.totalorder %v561_v33, %v568_v30 }
  0x3e   :  { %931 = vmatmul.mubr.f32.gmra.mrb[4].mxu0 %v31_v34  ;;  %994 = vmatmul.mubr.f32.gmra.mrb[4].mxu1 %v73_v35  ;;  %vm1266_vm5 = vmand %vm563_vm3, %vm569_vm4  ;;  %v560_v34 = vadd.s32 256, %v558_v26 }
  0x3f   :  { %933 = vmatprep.mubr.f32.mxu0 %v32_v36  ;;  %996 = vmatprep.mubr.f32.mxu1 %v74_v37  ;;  %vm1270_vm8 = vmand %vm566_vm6, %vm572_vm7 }
  0x40   :  { %vm565_vm9 = vcmp.ge.s32.totalorder %v560_v34, %v562_v29  ;;  %vm571_vm10 = vcmp.lt.s32.totalorder %v560_v34, %v568_v30 }
  0x41   :  { %vm1274_vm11 = vmand %vm565_vm9, %vm571_vm10 }
  0x42   :  { %934 = vmatmul.mubr.f32.gmra.mrb[6].mxu0 %v33_v38  ;;  %997 = vmatmul.mubr.f32.gmra.mrb[6].mxu1 %v75_v39 }
  0x43   :  { %936 = vmatprep.mubr.f32.mxu0 %v34_v40  ;;  %999 = vmatprep.mubr.f32.mxu1 %v76_v41 }
  0x46   :  { %937 = vmatmul.mubr.f32.gmra.mrb[8].mxu0 %v35_v42  ;;  %1000 = vmatmul.mubr.f32.gmra.mrb[8].mxu1 %v77_v43 }
  0x47   :  { %939 = vmatprep.mubr.f32.mxu0 %v36_v44  ;;  %1002 = vmatprep.mubr.f32.mxu1 %v78_v45 }
  0x4a   :  { %940 = vmatmul.mubr.f32.gmra.mrb[10].mxu0 %v37_v46  ;;  %1003 = vmatmul.mubr.f32.gmra.mrb[10].mxu1 %v79_v47 }
  0x4b   :  { %942 = vmatprep.mubr.f32.mxu0 %v38_v48  ;;  %1005 = vmatprep.mubr.f32.mxu1 %v80_v49 }
  0x4e   :  { %943 = vmatmul.mubr.f32.gmra.mrb[12].mxu0 %v39_v50  ;;  %1006 = vmatmul.mubr.f32.gmra.mrb[12].mxu1 %v81_v51 }
  0x4f   :  { %945 = vmatprep.mubr.f32.mxu0 %v40_v52  ;;  %1008 = vmatprep.mubr.f32.mxu1 %v82_v53 }
  0x52   :  { %946 = vmatmul.mubr.f32.gmra.mrb[14].mxu0 %v41_v54  ;;  %1009 = vmatmul.mubr.f32.gmra.mrb[14].mxu1 %v83_v55 }
  0x53   :  { %948 = vmatprep.mubr.f32.mxu0 %v42_v56  ;;  %1011 = vmatprep.mubr.f32.mxu1 %v84_v57 }
  0x56   :  { %949 = vmatmul.mubr.f32.gmra.mrb[16].mxu0 %v43_v58  ;;  %1012 = vmatmul.mubr.f32.gmra.mrb[16].mxu1 %v85_v59 }
  0x57   :  { %951 = vmatprep.mubr.f32.mxu0 %v44_v60  ;;  %1014 = vmatprep.mubr.f32.mxu1 %v86_v61 }
  0x5a   :  { %952 = vmatmul.mubr.f32.gmra.mrb[18].mxu0 %v45_v62  ;;  %1015 = vmatmul.mubr.f32.gmra.mrb[18].mxu1 %v87_v63 }
  0x5b   :  { %954 = vmatprep.mubr.f32.mxu0 %v46_v0  ;;  %1017 = vmatprep.mubr.f32.mxu1 %v88_v1 }
  0x5e   :  { %955 = vmatmul.mubr.f32.gmra.mrb[20].mxu0 %v47_v2  ;;  %1018 = vmatmul.mubr.f32.gmra.mrb[20].mxu1 %v89_v3 }
  0x5f   :  { %957 = vmatprep.mubr.f32.mxu0 %v48_v4  ;;  %738 = vmatprep.mubr.msk.f32.mxu1 %vm574_vm2, %v1188_v31 }
  0x62   :  { %958 = vmatmul.mubr.f32.gmra.mrb[22].mxu0 %v49_v5 }
  0x63   :  { %960 = vmatprep.mubr.f32.mxu0 %v50_v6 }
  0x66   :  { %961 = vmatmul.mubr.f32.gmra.mrb[24].mxu0 %v51_v7 }
  0x67   :  { %963 = vmatprep.mubr.f32.mxu0 %v52_v8 }
  0x6a   :  { %964 = vmatmul.mubr.f32.gmra.mrb[26].mxu0 %v53_v9 }
  0x6b   :  { %966 = vmatprep.mubr.f32.mxu0 %v54_v10 }
  0x6e   :  { %967 = vmatmul.mubr.f32.gmra.mrb[28].mxu0 %v55_v11 }
  0x6f   :  { %969 = vmatprep.mubr.f32.mxu0 %v56_v12 }
  0x72   :  { %970 = vmatmul.mubr.f32.gmra.mrb[30].mxu0 %v57_v13 }
  0x73   :  { %972 = vmatprep.mubr.f32.mxu0 %v58_v14 }
  0x76   :  { %973 = vmatmul.mubr.f32.gmra.mrb[32].mxu0 %v59_v15 }
  0x77   :  { %975 = vmatprep.mubr.f32.mxu0 %v60_v16 }
  0x7a   :  { %976 = vmatmul.mubr.f32.gmra.mrb[34].mxu0 %v61_v17 }
  0x7b   :  { %978 = vmatprep.mubr.f32.mxu0 %v62_v18 }
  0x7e   :  { %979 = vmatmul.mubr.f32.gmra.mrb[36].mxu0 %v63_v19 }
  0x7f   :  { %981 = vmatprep.mubr.f32.mxu0 %v64_v20 }
  0x82   :  { %982 = vmatmul.mubr.f32.gmra.mrb[38].mxu0 %v65_v21 }
  0x83   :  { %984 = vmatprep.mubr.f32.mxu0 %v66_v22 }
  0x86   :  { %985 = vmatmul.mubr.f32.gmra.mrb[40].mxu0 %v67_v23 }
 0x109   :  { %v926_v37 = vpop.f32.mrb[0].mxu0  ;;  %v989_v38 = vpop.f32.mrb[0].mxu1 }
 0x10a   :  { %v492_v39 = vmax.f32 %v926_v37, 0.0  ;;  %v172_v40 = vpop.f32.mrb[1].mxu0  ;;  %v534_v41 = vmax.f32 %v989_v38, 0.0  ;;  %v382_v42 = vpop.f32.mrb[1].mxu1 }
 0x10b   :  { %v491_v43 = vmax.f32 %v172_v40, 0.0  ;;  %v533_v44 = vmax.f32 %v382_v42, 0.0 }
 0x10d   :  { %v1278_v45 = vpack.c.bf16 %v492_v39, %v491_v43  ;;  %v929_v46 = vpop.f32.mrb[2].mxu0  ;;  %v1280_v47 = vpack.c.bf16 %v534_v41, %v533_v44  ;;  %v992_v48 = vpop.f32.mrb[2].mxu1 }
 0x10e   :  { %v494_v49 = vmax.f32 %v929_v46, 0.0  ;;  %v182_v50 = vpop.f32.mrb[3].mxu0  ;;  %v536_v51 = vmax.f32 %v992_v48, 0.0  ;;  %v392_v52 = vpop.f32.mrb[3].mxu1 }
 0x10f   :  { %v493_v53 = vmax.f32 %v182_v50, 0.0  ;;  %v535_v54 = vmax.f32 %v392_v52, 0.0 }
 0x111   :  { %v1282_v55 = vpack.c.bf16 %v494_v49, %v493_v53  ;;  %v932_v56 = vpop.f32.mrb[4].mxu0  ;;  %v1284_v57 = vpack.c.bf16 %v536_v51, %v535_v54  ;;  %v995_v58 = vpop.f32.mrb[4].mxu1 }
 0x112   :  { %v496_v59 = vmax.f32 %v932_v56, 0.0  ;;  %v192_v60 = vpop.f32.mrb[5].mxu0  ;;  %v538_v61 = vmax.f32 %v995_v58, 0.0  ;;  %v402_v62 = vpop.f32.mrb[5].mxu1 }
 0x113   :  { %v495_v63 = vmax.f32 %v192_v60, 0.0  ;;  %v537_v0 = vmax.f32 %v402_v62, 0.0 }
 0x115   :  { %v1286_v1 = vpack.c.bf16 %v496_v59, %v495_v63  ;;  %v935_v2 = vpop.f32.mrb[6].mxu0  ;;  %v1288_v3 = vpack.c.bf16 %v538_v61, %v537_v0  ;;  %v998_v4 = vpop.f32.mrb[6].mxu1 }
 0x116   :  { %v498_v5 = vmax.f32 %v935_v2, 0.0  ;;  %v202_v6 = vpop.f32.mrb[7].mxu0  ;;  %v540_v7 = vmax.f32 %v998_v4, 0.0  ;;  %v412_v8 = vpop.f32.mrb[7].mxu1 }
 0x117   :  { %v497_v9 = vmax.f32 %v202_v6, 0.0  ;;  %v539_v10 = vmax.f32 %v412_v8, 0.0 }
 0x119   :  { %v1290_v11 = vpack.c.bf16 %v498_v5, %v497_v9  ;;  %v938_v12 = vpop.f32.mrb[8].mxu0  ;;  %v1292_v13 = vpack.c.bf16 %v540_v7, %v539_v10  ;;  %v1001_v14 = vpop.f32.mrb[8].mxu1 }
 0x11a   :  { %v500_v15 = vmax.f32 %v938_v12, 0.0  ;;  %v212_v16 = vpop.f32.mrb[9].mxu0  ;;  %v542_v17 = vmax.f32 %v1001_v14, 0.0  ;;  %v422_v18 = vpop.f32.mrb[9].mxu1 }
 0x11b   :  { %v499_v19 = vmax.f32 %v212_v16, 0.0  ;;  %v541_v20 = vmax.f32 %v422_v18, 0.0 }
 0x11d   :  { %v1294_v21 = vpack.c.bf16 %v500_v15, %v499_v19  ;;  %v941_v22 = vpop.f32.mrb[10].mxu0  ;;  %v1296_v23 = vpack.c.bf16 %v542_v17, %v541_v20  ;;  %v1004_v24 = vpop.f32.mrb[10].mxu1 }
 0x11e   :  { %v502_v25 = vmax.f32 %v941_v22, 0.0  ;;  %v222_v26 = vpop.f32.mrb[11].mxu0  ;;  %v544_v27 = vmax.f32 %v1004_v24, 0.0  ;;  %v432_v28 = vpop.f32.mrb[11].mxu1 }
 0x11f   :  { %v501_v29 = vmax.f32 %v222_v26, 0.0  ;;  %v543_v30 = vmax.f32 %v432_v28, 0.0 }
 0x121   :  { %v1298_v33 = vpack.c.bf16 %v502_v25, %v501_v29  ;;  %v944_v34 = vpop.f32.mrb[12].mxu0  ;;  %v1300_v37 = vpack.c.bf16 %v544_v27, %v543_v30  ;;  %v1007_v38 = vpop.f32.mrb[12].mxu1 }
 0x122   :  { %v504_v39 = vmax.f32 %v944_v34, 0.0  ;;  %v232_v40 = vpop.f32.mrb[13].mxu0  ;;  %v546_v41 = vmax.f32 %v1007_v38, 0.0  ;;  %v442_v42 = vpop.f32.mrb[13].mxu1 }
 0x123   :  { %v503_v43 = vmax.f32 %v232_v40, 0.0  ;;  %v545_v44 = vmax.f32 %v442_v42, 0.0 }
 0x125   :  { %v1302_v46 = vpack.c.bf16 %v504_v39, %v503_v43  ;;  %v947_v48 = vpop.f32.mrb[14].mxu0  ;;  %v1304_v49 = vpack.c.bf16 %v546_v41, %v545_v44  ;;  %v1010_v50 = vpop.f32.mrb[14].mxu1 }
 0x126   :  { %v506_v51 = vmax.f32 %v947_v48, 0.0  ;;  %v242_v52 = vpop.f32.mrb[15].mxu0  ;;  %v548_v53 = vmax.f32 %v1010_v50, 0.0  ;;  %v452_v54 = vpop.f32.mrb[15].mxu1 }
 0x127   :  { %v505_v56 = vmax.f32 %v242_v52, 0.0  ;;  %v547_v58 = vmax.f32 %v452_v54, 0.0 }
 0x129   :  { %v1306_v59 = vpack.c.bf16 %v506_v51, %v505_v56  ;;  %v950_v60 = vpop.f32.mrb[16].mxu0  ;;  %v1308_v61 = vpack.c.bf16 %v548_v53, %v547_v58  ;;  %v1013_v62 = vpop.f32.mrb[16].mxu1 }
 0x12a   :  { %v508_v63 = vmax.f32 %v950_v60, 0.0  ;;  %v252_v0 = vpop.f32.mrb[17].mxu0  ;;  %v550_v2 = vmax.f32 %v1013_v62, 0.0  ;;  %v462_v4 = vpop.f32.mrb[17].mxu1 }
 0x12b   :  { %v507_v5 = vmax.f32 %v252_v0, 0.0  ;;  %v549_v6 = vmax.f32 %v462_v4, 0.0 }
 0x12d   :  { %v1052_v7 = vpack.c.bf16 %v508_v63, %v507_v5  ;;  %v953_v8 = vpop.f32.mrb[18].mxu0  ;;  %v1310_v9 = vpack.c.bf16 %v550_v2, %v549_v6  ;;  %v1016_v10 = vpop.f32.mrb[18].mxu1 }
 0x12e   :  { %v510_v12 = vmax.f32 %v953_v8, 0.0  ;;  %v262_v14 = vpop.f32.mrb[19].mxu0  ;;  %v552_v15 = vmax.f32 %v1016_v10, 0.0  ;;  %v472_v16 = vpop.f32.mrb[19].mxu1 }
 0x12f   :  { %v509_v17 = vmax.f32 %v262_v14, 0.0  ;;  %1053 = vmatprep.subr.bf16.mxu1 %v1052_v7  ;;  %v551_v18 = vmax.f32 %v472_v16, 0.0 }
 0x130   :  { %1055 = vmatpush3.bf16.msra.mxu1 %v1278_v45 }
 0x131   :  { %v1056_v19 = vpack.c.bf16 %v510_v12, %v509_v17  ;;  %v956_v20 = vpop.f32.mrb[20].mxu0  ;;  %v1313_v22 = vpack.c.bf16 %v552_v15, %v551_v18  ;;  %v1019_v24 = vpop.f32.mrb[20].mxu1 }
 0x132   :  { %v512_v25 = vmax.f32 %v956_v20, 0.0  ;;  %v272_v26 = vpop.f32.mrb[21].mxu0  ;;  %v554_v27 = vmax.f32 %v1019_v24, 0.0  ;;  %v482_v28 = vpop.f32.mrb[21].mxu1 }
 0x133   :  { %v511_v29 = vmax.f32 %v272_v26, 0.0  ;;  %1057 = vmatprep.subr.bf16.mxu1 %v1056_v19  ;;  %v553_v30 = vmax.f32 %v482_v28, 0.0 }
 0x134   :  { %1059 = vmatpush3.bf16.msra.mxu1 %v1282_v55 }
 0x135   :  { %v1060_v34 = vpack.c.bf16 %v512_v25, %v511_v29  ;;  %v959_v38 = vpop.f32.mrb[22].mxu0  ;;  %v1316_v39 = vpack.c.bf16 %v554_v27, %v553_v30 }
 0x136   :  { %v514_v40 = vmax.f32 %v959_v38, 0.0  ;;  %v282_v45 = vpop.f32.mrb[23].mxu0 }
 0x137   :  { %v513_v41 = vmax.f32 %v282_v45, 0.0  ;;  %1061 = vmatprep.subr.bf16.mxu1 %v1060_v34 }
 0x138   :  { %1063 = vmatpush3.bf16.msra.mxu1 %v1286_v1 }
 0x139   :  { %v1064_v42 = vpack.c.bf16 %v514_v40, %v513_v41  ;;  %v962_v43 = vpop.f32.mrb[24].mxu0 }
 0x13a   :  { %v516_v44 = vmax.f32 %v962_v43, 0.0  ;;  %v292_v48 = vpop.f32.mrb[25].mxu0 }
 0x13b   :  { %v515_v50 = vmax.f32 %v292_v48, 0.0  ;;  %1065 = vmatprep.subr.bf16.mxu1 %v1064_v42 }
 0x13c   :  { %1067 = vmatpush3.bf16.msra.mxu1 %v1290_v11 }
 0x13d   :  { %v1068_v51 = vpack.c.bf16 %v516_v44, %v515_v50  ;;  %v965_v55 = vpop.f32.mrb[26].mxu0 }
 0x13e   :  { %v518_v52 = vmax.f32 %v965_v55, 0.0  ;;  %v302_v53 = vpop.f32.mrb[27].mxu0 }
 0x13f   :  { %v517_v54 = vmax.f32 %v302_v53, 0.0  ;;  %1069 = vmatprep.subr.bf16.mxu1 %v1068_v51 }
 0x140   :  { %1071 = vmatpush3.bf16.msra.mxu1 %v1294_v21 }
 0x141   :  { %v1072_v56 = vpack.c.bf16 %v518_v52, %v517_v54  ;;  %v968_v58 = vpop.f32.mrb[28].mxu0 }
 0x142   :  { %v520_v60 = vmax.f32 %v968_v58, 0.0  ;;  %v312_v1 = vpop.f32.mrb[29].mxu0 }
 0x143   :  { %v519_v62 = vmax.f32 %v312_v1, 0.0  ;;  %1073 = vmatprep.subr.bf16.mxu1 %v1072_v56 }
 0x144   :  { %1075 = vmatpush3.bf16.msra.mxu1 %v1298_v33 }
 0x145   :  { %v1076_v63 = vpack.c.bf16 %v520_v60, %v519_v62  ;;  %v971_v0 = vpop.f32.mrb[30].mxu0 }
 0x146   :  { %v522_v2 = vmax.f32 %v971_v0, 0.0  ;;  %v322_v11 = vpop.f32.mrb[31].mxu0 }
 0x147   :  { %v521_v4 = vmax.f32 %v322_v11, 0.0  ;;  %1077 = vmatprep.subr.bf16.mxu1 %v1076_v63 }
 0x148   :  { %1079 = vmatpush3.bf16.msra.mxu1 %v1302_v46 }
 0x149   :  { %v1080_v5 = vpack.c.bf16 %v522_v2, %v521_v4  ;;  %v974_v6 = vpop.f32.mrb[32].mxu0 }
 0x14a   :  { %v524_v7 = vmax.f32 %v974_v6, 0.0  ;;  %v332_v21 = vpop.f32.mrb[33].mxu0 }
 0x14b   :  { %v523_v8 = vmax.f32 %v332_v21, 0.0  ;;  %1081 = vmatprep.subr.bf16.mxu1 %v1080_v5 }
 0x14c   :  { %1083 = vmatpush3.bf16.msra.mxu1 %v1306_v59 }
 0x14d   :  { %v1086_v10 = vpack.c.bf16 %v524_v7, %v523_v8  ;;  %v977_v12 = vpop.f32.mrb[34].mxu0  ;;  %1085 = vmatprep.subr.bf16.mxu1 %v1292_v13 }
 0x14e   :  { %v526_v33 = vmax.f32 %v977_v12, 0.0  ;;  %v342_v14 = vpop.f32.mrb[35].mxu0 }
 0x14f   :  { %v525_v15 = vmax.f32 %v342_v14, 0.0  ;;  %739 = vmatmul.mubr.msk.f32.vlgmr.msra.gmra.mrb[22].mxu1 %vm1266_vm5, %v1188_v31 }
 0x150   :  { %1087 = vmatpush3.bf16.msra.mxu1 %v1086_v10  ;;  %740 = vmatprep.mubr.msk.f32.mxu1 %vm1270_vm8, %v1188_v31 }
 0x151   :  { %v1090_v46 = vpack.c.bf16 %v526_v33, %v525_v15  ;;  %v980_v16 = vpop.f32.mrb[36].mxu0  ;;  %1089 = vmatprep.subr.bf16.mxu1 %v1296_v23 }
 0x152   :  { %v528_v59 = vmax.f32 %v980_v16, 0.0  ;;  %v352_v17 = vpop.f32.mrb[37].mxu0 }
 0x153   :  { %v527_v18 = vmax.f32 %v352_v17, 0.0 }
 0x154   :  { %1091 = vmatpush3.bf16.msra.mxu1 %v1090_v46 }
 0x155   :  { %v1094_v13 = vpack.c.bf16 %v528_v59, %v527_v18  ;;  %v983_v19 = vpop.f32.mrb[38].mxu0  ;;  %1093 = vmatprep.subr.bf16.mxu1 %v1300_v37 }
 0x156   :  { %v530_v20 = vmax.f32 %v983_v19, 0.0  ;;  %v362_v32 = vpop.f32.mrb[39].mxu0 }
 0x157   :  { %v529_v24 = vmax.f32 %v362_v32, 0.0 }
 0x158   :  { %1095 = vmatpush3.bf16.msra.mxu1 %v1094_v13 }
 0x159   :  { %v1098_v25 = vpack.c.bf16 %v530_v20, %v529_v24  ;;  %v986_v26 = vpop.f32.mrb[40].mxu0  ;;  %1097 = vmatprep.subr.bf16.mxu1 %v1304_v49 }
 0x15a   :  { %v532_v35 = vmax.f32 %v986_v26, 0.0  ;;  %v372_v27 = vpop.f32.mrb[41].mxu0 }
 0x15b   :  { %v531_v28 = vmax.f32 %v372_v27, 0.0 }
 0x15c   :  { %1099 = vmatpush3.bf16.msra.mxu1 %v1098_v25 }
 0x15d   :  { %v1102_v23 = vpack.c.bf16 %v532_v35, %v531_v28  ;;  %1101 = vmatprep.subr.bf16.mxu1 %v1308_v61 }
 0x160   :  { %1103 = vmatpush3.bf16.msra.mxu1 %v1102_v23 }
 0x161   :  { %1105 = vmatprep.subr.bf16.mxu1 %v1310_v9 }
 0x164   :  { %1107 = vmatpush3.bf16.msra.mxu1 %v1280_v47 }
 0x165   :  { %1109 = vmatprep.subr.bf16.mxu1 %v1313_v22 }
 0x168   :  { %1111 = vmatpush3.bf16.msra.mxu1 %v1284_v57 }
 0x169   :  { %1113 = vmatprep.subr.bf16.mxu1 %v1316_v39 }
 0x16c   :  { %1115 = vmatpush3.bf16.msra.mxu1 %v1288_v3 }
 0x16f   :  { %741 = vmatmul.mubr.msk.f32.vlgmr.msra.gmra.mrb[24].mxu1 %vm1274_vm11, %v1188_v31 }
 0x222   :  { %v854_v37 = vpop.f32.mrb[22].mxu1 }
 0x223   :  { %v855_v49 = vpop.f32.mrb[23].mxu1 }
 0x224   :  { %v856_v61 = vadd.f32 %v855_v49, %v854_v37 }
 0x242   :  { %v889_v29 = vpop.f32.mrb[24].mxu1 }
 0x243   :  { %v890_v30 = vpop.f32.mrb[25].mxu1 }
 0x244   :  { %v891_v47 = vadd.f32 %v890_v30, %v889_v29 }
 0x246   :  { %v718_v9 = vadd.f32 %v891_v47, %v856_v61 }
 0x248   :  { %722 = vst.msk [vmem:[#allocation5] sm:$0x3] %vm721_vm12, %v718_v9 }
 0x249   :  { %1170 = shalt.err (!%p1167_p12)
}
 0x24a   :  { %s1171_s30 = scalar_lea.hbm %s1358_s2, 32 }
 0x24b   :  { %p1172_p13 = scmp.ne.s32.totalorder %s1358_s2, %s1171_s30  ;;  %p1175_p0 = scmp.lt.u32.totalorder %s1171_s30, %s1358_s2 }
 0x24d   :  { %p1177_p1 = pnand %p1175_p0, %p1172_p13 }
 0x24f   :  { %1180 = shalt.err (!%p1177_p1)
}
 0x250   :  { %732 = dma.vmem_to_hbm [thread:$0]  %s730_s26, 32, %s1358_s2, [#allocation4]  }
 0x251   :  { %1183 = dma.done.wait [#allocation4], 32  }
 0x252   :  { %1184 = vsyncadd [#allocation4], 4294967264 }
 0x253   :  { %736 = vsyncpa [#allocation3], 1 }
 0x254   :  { %737 = vsyncpa [#allocation4], 1 }

</bundles_post_ra>
